<compile_context>
chip_gen: v6e
topology: v6e:2x2x1
jax: 0.10.0
libtpu: 0.0.40
codegen_flags: <defaults>
</compile_context>

<pallas_src>
import functools

import jax
import jax.numpy as jnp
from jax.experimental import pallas as pl
from jax.experimental.pallas import tpu as pltpu


def _agg_kernel(x_ref, o_ref, *, dim, bias, seq_len, tl):
    """One grid step reduces TL sequence positions of one batch block.

    x_ref : (TB, TL, 2*dim)  input slab, native dtype/layout
    o_ref : (TB, 2*dim)      f32 accumulator, resident across the L grid axis
    """
    lstep = pl.program_id(1)

    @pl.when(lstep == 0)
    def _():
        o_ref[...] = jnp.zeros_like(o_ref)

    x = x_ref[...].astype(jnp.float32)          # cast in-kernel (bf16 streams as bf16)
    d = x[:, :, :dim] - x[:, :, dim:]           # x @ W.T == [d, -d]
    p = jnp.maximum(d - bias, 0.0)              # relu(x1 - x2 - bias)
    n = jnp.maximum(-d - bias, 0.0)             # relu(x2 - x1 - bias)

    rem = seq_len % tl
    if rem == 0:
        # Hot path: no tail masking anywhere, two half-sums (no concat temp).
        o_ref[:, :dim] += jnp.sum(p, axis=1)
        o_ref[:, dim:] += jnp.sum(n, axis=1)
    else:
        last = pl.num_programs(1) - 1

        @pl.when(lstep != last)
        def _():
            o_ref[:, :dim] += jnp.sum(p, axis=1)
            o_ref[:, dim:] += jnp.sum(n, axis=1)

        @pl.when(lstep == last)
        def _():
            # Cold path: mask padded tail *after* the ReLU (relu(0 - bias)
            # can be nonzero for negative bias).
            l_idx = jax.lax.broadcasted_iota(jnp.int32, p.shape, 1)
            o_ref[:, :dim] += jnp.sum(jnp.where(l_idx < rem, p, 0.0), axis=1)
            o_ref[:, dim:] += jnp.sum(jnp.where(l_idx < rem, n, 0.0), axis=1)


def _tpu_vmem_bytes():
    """Per-core VMEM capacity (generation-aware tile sizing)."""
    try:
        info = pltpu.get_tpu_info()
        return int(getattr(info, "vmem_capacity_bytes", 64 << 20))
    except Exception:
        return 64 << 20        # conservative default (v7x per-TC VMEM)


def _choose_tiles(batch, seq_len, d2, itemsize, slab_target):
    """(TB, TL) batch/sequence block sizes whose input slab stays under
    `slab_target` bytes (the pipeline double-buffers it in VMEM)."""
    sub = 8 * max(1, 4 // itemsize)           # sublane packing multiple (8/16/32)
    row_bytes = d2 * itemsize                 # one sequence position of one batch row
    tb = batch
    tl = (slab_target // max(1, tb * row_bytes)) // sub * sub
    if tl == 0:
        # batch * d2 too large for even `sub` sequence rows: block the batch too.
        tb = slab_target // max(1, sub * row_bytes)
        tb = max(8, tb // 8 * 8)              # output block sublane constraint
        tb = min(tb, batch)
        tl = sub
    if tl >= seq_len:
        tl = seq_len                          # full L axis -> no (8, *) constraint
    return tb, tl


def linear_aggregator(x, dim, bias=0.0):
    """x: (B, L, 2*dim) any float dtype -> (B, 2*dim) float32."""
    B, L, D2 = x.shape
    assert D2 == 2 * dim, "last dim must equal 2*dim"

    if L == 0:   # empty grid would leave the accumulator uninitialized
        return jnp.zeros((B, D2), dtype=jnp.float32)

    itemsize = jnp.dtype(x.dtype).itemsize
    vmem_cap = _tpu_vmem_bytes()
    # Multi-MiB slabs hide the per-grid-step overhead behind the HBM stream;
    # cap so the double-buffered slab stays well inside VMEM on every
    # generation (~8 MiB slab on v7x's 64 MiB, 16 MiB on v5e/v6e's 128 MiB).
    slab_target = min(vmem_cap // 8, 16 << 20)
    tb, tl = _choose_tiles(B, L, D2, itemsize, slab_target)

    slab_bytes = tb * tl * D2 * itemsize
    out_bytes = tb * D2 * 4
    vmem_limit = int(min(vmem_cap * 3 // 4,
                         max(16 << 20, 2 * slab_bytes + 2 * out_bytes + (4 << 20))))

    kernel = functools.partial(
        _agg_kernel, dim=dim, bias=float(bias), seq_len=L, tl=tl)

    return pl.pallas_call(
        kernel,
        out_shape=jax.ShapeDtypeStruct((B, D2), jnp.float32),
        grid_spec=pltpu.PrefetchScalarGridSpec(
            num_scalar_prefetch=0,
            grid=(pl.cdiv(B, tb), pl.cdiv(L, tl)),
            in_specs=[
                # Native layout: last two block dims (TL, 2*dim) are lane-dense.
                # TODO(synk): if 2*dim < 128, fold 128 // (2*dim) sequence
                # positions into the lane axis (wrapper reshape + pltpu.roll
                # half-swap) to avoid partial-lane vregs and masked stores.
                pl.BlockSpec((tb, tl, D2), lambda b, l: (b, l, 0)),
            ],
            # Per-batch-block accumulator, resident across the L grid axis.
            out_specs=pl.BlockSpec((tb, D2), lambda b, l: (b, 0)),
        ),
        compiler_params=pltpu.CompilerParams(
            # Batch blocks are independent ("parallel" -> v7x megacore split);
            # L is the reduction axis the accumulator is resident across.
            # TODO(synk): for tiny B on v7x, split L into 2 partial
            # accumulators (summed in the wrapper) so both TensorCores work.
            dimension_semantics=("parallel", "arbitrary"),
            vmem_limit_bytes=vmem_limit,
        ),
    )(x)


def _reference(x, dim, bias=0.0):
    w = jnp.eye(2 * dim, dtype=jnp.float32)
    w = w.at[:dim, dim:].set(-jnp.eye(dim, dtype=jnp.float32))
    w = w.at[dim:, :dim].set(-jnp.eye(dim, dtype=jnp.float32))
    b = -jnp.ones((2 * dim,), dtype=jnp.float32) * bias
    y = jnp.einsum("bld,ed->ble", x.astype(jnp.float32), w) + b
    return jnp.maximum(y, 0.0).sum(axis=1)


if __name__ == "__main__":
    B, L, dim = 2, 8, 16
    bias_val = 0.1
    key = jax.random.PRNGKey(0)
    x = jax.random.normal(key, (B, L, 2 * dim), dtype=jnp.float32)

    out = jax.block_until_ready(linear_aggregator(x, dim, bias=bias_val))

    ref = _reference(x, dim, bias=bias_val)
    assert out.shape == (B, 2 * dim)
    assert jnp.allclose(out, ref, atol=1e-5, rtol=1e-5)
    print("KERNEL_OK")
</pallas_src>

<mosaic_0001>
module attributes {stable_mosaic.version = 11 : i64} {
  func.func @_agg_kernel(%arg0: i32, %arg1: i32, %arg2: memref<2x8x32xf32, #tpu.memory_space<vmem>>, %arg3: memref<2x32xf32, #tpu.memory_space<vmem>>) attributes {dimension_semantics = [#tpu.dimension_semantics<parallel>, #tpu.dimension_semantics<arbitrary>], iteration_bounds = array<i64: 1, 1>, scalar_prefetch = 0 : i64, scratch_operands = 0 : i64, tpu.core_type = #tpu.core_type<tc>, window_params = [{transform_indices = @transform_0, window_bounds = array<i64: 2, 8, 32>}, {transform_indices = @transform_1, window_bounds = array<i64: 2, 32>}]} {
    %c0_i32 = arith.constant 0 : i32
    %0 = arith.cmpi eq, %arg1, %c0_i32 : i32
    %1 = arith.extui %0 : i1 to i32
    %c0_i32_0 = arith.constant 0 : i32
    %2 = arith.cmpi ne, %1, %c0_i32_0 : i32
    scf.if %2 {
      %cst_16 = arith.constant 0.000000e+00 : f32
      %25 = vector.broadcast %cst_16 : f32 to vector<2x32xf32>
      %c0_17 = arith.constant 0 : index
      %c0_18 = arith.constant 0 : index
      %26 = vector.load %arg3[%c0_17, %c0_18] : memref<2x32xf32, #tpu.memory_space<vmem>>, vector<2x32xf32>
      tpu.vector_store %arg3[%c0_17, %c0_18], %25 {strides = array<i32>} : memref<2x32xf32, #tpu.memory_space<vmem>>, vector<2x32xf32>,
    } else {
    }
    %c0 = arith.constant 0 : index
    %c0_1 = arith.constant 0 : index
    %c0_2 = arith.constant 0 : index
    %3 = vector.load %arg2[%c0, %c0_1, %c0_2] : memref<2x8x32xf32, #tpu.memory_space<vmem>>, vector<2x8x32xf32>
    %4 = vector.extract_strided_slice %3 {offsets = [0, 0, 0], sizes = [2, 8, 16], strides = [1, 1, 1]} : vector<2x8x32xf32> to vector<2x8x16xf32>
    %5 = vector.extract_strided_slice %3 {offsets = [0, 0, 16], sizes = [2, 8, 16], strides = [1, 1, 1]} : vector<2x8x32xf32> to vector<2x8x16xf32>
    %6 = arith.subf %4, %5 : vector<2x8x16xf32>
    %cst = arith.constant 1.000000e-01 : f32
    %7 = vector.broadcast %cst : f32 to vector<2x8x16xf32>
    %8 = arith.subf %6, %7 : vector<2x8x16xf32>
    %cst_3 = arith.constant 0.000000e+00 : f32
    %9 = vector.broadcast %cst_3 : f32 to vector<2x8x16xf32>
    %10 = arith.maximumf %8, %9 : vector<2x8x16xf32>
    %cst_4 = arith.constant 0.000000e+00 : f32
    %11 = vector.broadcast %cst_4 : f32 to vector<2x8x16xf32>
    %12 = arith.subf %11, %6 : vector<2x8x16xf32>
    %cst_5 = arith.constant 1.000000e-01 : f32
    %13 = vector.broadcast %cst_5 : f32 to vector<2x8x16xf32>
    %14 = arith.subf %12, %13 : vector<2x8x16xf32>
    %cst_6 = arith.constant 0.000000e+00 : f32
    %15 = vector.broadcast %cst_6 : f32 to vector<2x8x16xf32>
    %16 = arith.maximumf %14, %15 : vector<2x8x16xf32>
    %c0_7 = arith.constant 0 : index
    %c0_8 = arith.constant 0 : index
    %17 = vector.load %arg3[%c0_7, %c0_8] : memref<2x32xf32, #tpu.memory_space<vmem>>, vector<2x16xf32>
    %cst_9 = arith.constant dense<0.000000e+00> : vector<2x16xf32>
    %18 = vector.multi_reduction <add>, %10, %cst_9 [1] : vector<2x8x16xf32> to vector<2x16xf32>
    %19 = arith.addf %17, %18 : vector<2x16xf32>
    %c0_10 = arith.constant 0 : index
    %c0_11 = arith.constant 0 : index
    %20 = vector.load %arg3[%c0_10, %c0_11] : memref<2x32xf32, #tpu.memory_space<vmem>>, vector<2x16xf32>
    tpu.vector_store %arg3[%c0_10, %c0_11], %19 {strides = array<i32>} : memref<2x32xf32, #tpu.memory_space<vmem>>, vector<2x16xf32>,
    %c0_12 = arith.constant 0 : index
    %c16 = arith.constant 16 : index
    %21 = vector.load %arg3[%c0_12, %c16] : memref<2x32xf32, #tpu.memory_space<vmem>>, vector<2x16xf32>
    %cst_13 = arith.constant dense<0.000000e+00> : vector<2x16xf32>
    %22 = vector.multi_reduction <add>, %16, %cst_13 [1] : vector<2x8x16xf32> to vector<2x16xf32>
    %23 = arith.addf %21, %22 : vector<2x16xf32>
    %c0_14 = arith.constant 0 : index
    %c16_15 = arith.constant 16 : index
    %24 = vector.load %arg3[%c0_14, %c16_15] : memref<2x32xf32, #tpu.memory_space<vmem>>, vector<2x16xf32>
    tpu.vector_store %arg3[%c0_14, %c16_15], %23 {strides = array<i32>} : memref<2x32xf32, #tpu.memory_space<vmem>>, vector<2x16xf32>,
    return
  }
  func.func @transform_0(%arg0: i32, %arg1: i32) -> (i32, i32, i32) {
    %c0_i32 = arith.constant 0 : i32
    %c0_i32_0 = arith.constant 0 : i32
    return %arg0, %arg1, %c0_i32 : i32, i32, i32
  }
  func.func @transform_1(%arg0: i32, %arg1: i32) -> (i32, i32) {
    %c0_i32 = arith.constant 0 : i32
    %c0_i32_0 = arith.constant 0 : i32
    return %arg0, %c0_i32 : i32, i32
  }
}

</mosaic_0001>

<bundles_post_ra>
// kernel: tpu_custom_call.1
= control target key start
LH: loop header
LB: loop body
LE: loop exit
PB: predicated region body
PF: predicated region fallthrough
CT: control target
= control target key end

     0   :  { %6 = vsyncpa [#allocation3], 0  ;;  %s196_s0 = inlined_call_operand.hbm [shape: f32[2,8,32], index: 0, kind: input, shape index: {}]   ;;  %s197_s1 = inlined_call_operand.hbm [shape: f32[2,32], index: 1, kind: output, shape index: {}]  }
   0x1   :  { %7 = vsyncpa [#allocation4], 0  ;;  %s169_s6 = smov [#allocation2]  }
   0x2   :  { %s13_s7 = sshll.u32 %s169_s6, 4  ;;  %s14_s7 = int_to_ptr.vmem [resolvable:$true] %s13_s7 }
   0x3   :  { %s133_s8 = scalar_lea.vmem %s14_s7, 256  ;;  %p138_p1 = scmp.lt.s32.totalorder %s14_s7, %s14_s7 }
   0x4   :  { %p134_p0 = scmp.ne.s32.totalorder %s14_s7, %s133_s8  ;;  %p139_p2 = scmp.lt.s32.totalorder %s133_s8, %s133_s8 }
   0x6   :  { %p140_p3 = por %p139_p2, %p138_p1 }
   0x8   :  { %p141_p4 = pnand %p140_p3, %p134_p0 }
   0xa   :  { %144 = shalt.err (!%p141_p4)
}
   0xb   :  { %s170_s9 = smov 128   ;;  %s171_s10 = smov 8  }
   0xc   :  { %19 = dma.hbm_to_vmem [thread:$0]  %s196_s0, 256, %s14_s7, [#allocation3], %s170_s9, %s170_s9, %s171_s10  }
   0xd   :  { %165 = dma.done.wait [#allocation3], 256  }
   0xe   :  { %166 = vsyncadd [#allocation3], 4294967040  ;;  %vm27_vm0 = vcmask 254976   ;;  %v172_v0 = vmov 0.0   ;;  %v29_v1 = vld [vmem:[#allocation2] sm:$0xff]  ;;  %s173_s13 = smov 112  }
   0xf   :  { %28 = vst.msk [vmem:[#allocation5] sm:$0x3] %vm27_vm0, %v172_v0  ;;  %33 = vrot.lane.b32.xlu0 %v29_v1, %s173_s13  ;;  %v30_v2 = vld [vmem:[#allocation2 + $0x8] sm:$0xff]  ;;  %vm52_vm1 = vcmask 130048   ;;  %vm69_vm2 = vcmask 1041409   ;;  %vm73_vm3 = vcmask 123904  }
  0x10   :  { %s174_s0 = smov 16   ;;  %s175_s14 = smov [#allocation5]   ;;  %vm97_vm4 = vcmask 255104  }
  0x11   :  { %s105_s15 = sshll.u32 %s175_s14, 4  ;;  %s106_s15 = int_to_ptr.vmem [resolvable:$true] %s105_s15 }
  0x12   :  { %s145_s16 = scalar_lea.vmem %s106_s15, 32  ;;  %p150_p6 = scmp.lt.s32.totalorder %s106_s15, %s106_s15 }
  0x13   :  { %35 = vrot.lane.b32.xlu0 %v30_v2, %s173_s13  ;;  %p146_p5 = scmp.ne.s32.totalorder %s106_s15, %s145_s16  ;;  %p151_p7 = scmp.lt.s32.totalorder %s145_s16, %s145_s16 }
  0x15   :  { %p152_p8 = por %p151_p7, %p150_p6 }
  0x16   :  { %v51_v42 = vld [vmem:[#allocation5] sm:$0x3] }
  0x17   :  { %p153_p9 = pnand %p152_p8, %p146_p5 }
  0x81   :  { %v34_v3 = vpop.permute.xlu0 %33 }
  0x82   :  { %v39_v4 = vsub.f32 %v29_v1, %v34_v3 }
  0x84   :  { %v114_v5 = vadd.f32 -0.1, %v39_v4  ;;  %v45_v6 = vsub.f32 0.0, %v39_v4 }
  0x85   :  { %v36_v7 = vpop.permute.xlu0 %35 }
  0x86   :  { %v43_v8 = vmax.f32 %v114_v5, 0.0  ;;  %v116_v9 = vadd.f32 -0.1, %v45_v6  ;;  %v40_v10 = vsub.f32 %v30_v2, %v36_v7 }
  0x88   :  { %v49_v11 = vmax.f32 %v116_v9, 0.0  ;;  %v53_v12 = vsel %vm52_vm1, %v43_v8, 0.0  ;;  %v115_v13 = vadd.f32 -0.1, %v40_v10  ;;  %v46_v14 = vsub.f32 0.0, %v40_v10 }
  0x89   :  { %v54_v15 = vrot.slane %v53_v12, 4 }
  0x8a   :  { %v76_v16 = vsel %vm52_vm1, %v49_v11, 0.0  ;;  %v44_v17 = vmax.f32 %v115_v13, 0.0  ;;  %v117_v18 = vadd.f32 -0.1, %v46_v14 }
  0x8b   :  { %v55_v19 = vadd.f32 %v54_v15, %v53_v12  ;;  %v77_v20 = vrot.slane %v76_v16, 4 }
  0x8c   :  { %v50_v21 = vmax.f32 %v117_v18, 0.0  ;;  %v60_v22 = vsel %vm52_vm1, %v44_v17, 0.0 }
  0x8d   :  { %v56_v23 = vrot.slane %v55_v19, 2  ;;  %v78_v24 = vadd.f32 %v77_v20, %v76_v16  ;;  %v61_v25 = vrot.slane %v60_v22, 4 }
  0x8e   :  { %v83_v26 = vsel %vm52_vm1, %v50_v21, 0.0 }
  0x8f   :  { %v57_v27 = vadd.f32 %v56_v23, %v55_v19  ;;  %v79_v28 = vrot.slane %v78_v24, 2  ;;  %v62_v29 = vadd.f32 %v61_v25, %v60_v22  ;;  %v84_v30 = vrot.slane %v83_v26, 4 }
  0x91   :  { %v63_v31 = vrot.slane %v62_v29, 2  ;;  %v85_v32 = vadd.f32 %v84_v30, %v83_v26  ;;  %v80_v33 = vadd.f32 %v79_v28, %v78_v24  ;;  %v58_v34 = vrot.slane %v57_v27, 1 }
  0x93   :  { %v64_v35 = vadd.f32 %v63_v31, %v62_v29  ;;  %v86_v36 = vrot.slane %v85_v32, 2  ;;  %v81_v38 = vrot.slane %v80_v33, 1  ;;  %v59_v40 = vadd.f32 %v58_v34, %v57_v27 }
  0x95   :  { %v65_v37 = vrot.slane %v64_v35, 1  ;;  %v87_v39 = vadd.f32 %v86_v36, %v85_v32  ;;  %v82_v44 = vadd.f32 %v81_v38, %v80_v33 }
  0x97   :  { %v88_v41 = vrot.slane %v87_v39, 1  ;;  %v66_v43 = vadd.f32 %v65_v37, %v64_v35 }
  0x99   :  { %v89_v45 = vadd.f32 %v88_v41, %v87_v39  ;;  %v70_v46 = vsel %vm69_vm2, %v66_v43, %v59_v40 }
  0x9a   :  { %v72_v47 = vadd.f32 %v70_v46, %v51_v42 }
  0x9b   :  { %v92_v48 = vsel %vm69_vm2, %v89_v45, %v82_v44 }
  0x9c   :  { %93 = vrot.lane.b32.xlu1 %v92_v48, %s174_s0  ;;  %74 = vst.msk [vmem:[#allocation5] sm:$0x3] %vm73_vm3, %v72_v47 }
  0xa3   :  { %v75_v50 = vld [vmem:[#allocation5] sm:$0x3] }
 0x10e   :  { %v94_v49 = vpop.permute.xlu1 %93 }
 0x10f   :  { %v96_v51 = vadd.f32 %v94_v49, %v75_v50 }
 0x111   :  { %98 = vst.msk [vmem:[#allocation5] sm:$0x3] %vm97_vm4, %v96_v51 }
 0x112   :  { %156 = shalt.err (!%p153_p9)
}
 0x113   :  { %108 = dma.vmem_to_hbm [thread:$0]  %s106_s15, 32, %s197_s1, [#allocation4]  }
 0x114   :  { %167 = dma.done.wait [#allocation4], 32  }
 0x115   :  { %168 = vsyncadd [#allocation4], 4294967264 }
 0x116   :  { %112 = vsyncpa [#allocation3], 1 }
 0x117   :  { %113 = vsyncpa [#allocation4], 1 }

</bundles_post_ra>
